<compile_context>
chip_gen: v5e
topology: v5e:2x2
jax: 0.10.0
libtpu: 0.0.40
codegen_flags: <defaults>
</compile_context>

<pallas_src>
import jax
import jax.numpy as jnp
from jax.experimental import pallas as pl
from jax.experimental.pallas import tpu as pltpu


def _mlp_kernel(x_ref, w1_ref, b1_ref, w2_ref, b2_ref, o_ref):
    # Fused hot path: fc1 -> ReLU6 -> fc2, single VMEM-resident pass.
    # fc1: (B, F) @ (F, H) + (1, H)
    h = jnp.dot(x_ref[...], w1_ref[...], preferred_element_type=jnp.float32)
    h = h + b1_ref[...]
    # ReLU6: clamp to [0, 6]
    h = jnp.minimum(jnp.maximum(h, 0.0), 6.0)
    # fc2: (B, H) @ (H, A) + (1, A)
    y = jnp.dot(h, w2_ref[...], preferred_element_type=jnp.float32)
    o_ref[...] = y + b2_ref[...]


def net_forward(x, w1, b1, w2, b2):
    """Forward pass of Net (batched).

    x : (B, n_features)        float32
    w1: (n_features, hidden)   float32  (already transposed vs torch layout)
    b1: (hidden,)              float32
    w2: (hidden, n_actions)    float32  (already transposed vs torch layout)
    b2: (n_actions,)           float32
    returns (B, n_actions)     float32  (Q-values, same semantics as Net.forward)
    """
    B, F = x.shape
    H = w1.shape[1]
    A = w2.shape[1]

    b1_2d = b1.reshape(1, H)
    b2_2d = b2.reshape(1, A)

    # Whole-array operands, resident in VMEM, no grid: nothing to pipeline at
    # these shapes, so avoid all BlockSpec blocking/double-buffering overhead.
    vmem_spec = pl.BlockSpec(memory_space=pltpu.MemorySpace.VMEM)

    flops = 2 * B * (F * H + H * A)
    bytes_accessed = 4 * (B * F + F * H + H + H * A + A + B * A)
    cost = pl.CostEstimate(
        flops=flops, transcendentals=0, bytes_accessed=bytes_accessed
    )

    return pl.pallas_call(
        _mlp_kernel,
        out_shape=jax.ShapeDtypeStruct((B, A), jnp.float32),
        in_specs=[vmem_spec] * 5,
        out_specs=vmem_spec,
        cost_estimate=cost,
    )(x, w1, b1_2d, w2, b2_2d)


# Jit the wrapper so repeated calls pay only the dispatch of a single program.
net_forward_jit = jax.jit(net_forward)


def _ref_forward(x, w1, b1, w2, b2):
    h = x @ w1 + b1
    h = jnp.clip(h, 0.0, 6.0)
    return h @ w2 + b2


if __name__ == "__main__":
    # CartPole: n_features=4, n_actions=2, hidden=10 (from Net.__init__)
    n_features, hidden, n_actions = 4, 10, 2
    batch = 8

    key = jax.random.PRNGKey(0)
    kx, k1, kb1, k2, kb2 = jax.random.split(key, 5)

    x = jax.random.normal(kx, (batch, n_features), dtype=jnp.float32)
    # Torch layout would be (out, in); we directly create the (in, out)
    # transposed versions the kernel consumes.
    w1 = jax.random.normal(k1, (n_features, hidden), dtype=jnp.float32) * 0.5
    b1 = jax.random.normal(kb1, (hidden,), dtype=jnp.float32) * 0.1
    w2 = jax.random.normal(k2, (hidden, n_actions), dtype=jnp.float32) * 0.5
    b2 = jax.random.normal(kb2, (n_actions,), dtype=jnp.float32) * 0.1

    out = net_forward_jit(x, w1, b1, w2, b2)
    out = jax.block_until_ready(out)

    ref = _ref_forward(x, w1, b1, w2, b2)
    assert out.shape == (batch, n_actions)
    assert jnp.allclose(out, ref, atol=1e-5, rtol=1e-5)

    print("KERNEL_OK")
</pallas_src>

<mosaic_0001>
module attributes {stable_mosaic.version = 11 : i64} {
  func.func @_mlp_kernel(%arg0: memref<8x4xf32, #tpu.memory_space<vmem>>, %arg1: memref<4x10xf32, #tpu.memory_space<vmem>>, %arg2: memref<1x10xf32, #tpu.memory_space<vmem>>, %arg3: memref<10x2xf32, #tpu.memory_space<vmem>>, %arg4: memref<1x2xf32, #tpu.memory_space<vmem>>, %arg5: memref<8x2xf32, #tpu.memory_space<vmem>>) attributes {dimension_semantics = [], scalar_prefetch = 0 : i64, scratch_operands = 0 : i64, tpu.core_type = #tpu.core_type<tc>} {
    %c0 = arith.constant 0 : index
    %c0_0 = arith.constant 0 : index
    %0 = vector.load %arg0[%c0, %c0_0] : memref<8x4xf32, #tpu.memory_space<vmem>>, vector<8x4xf32>
    %c0_1 = arith.constant 0 : index
    %c0_2 = arith.constant 0 : index
    %1 = vector.load %arg1[%c0_1, %c0_2] : memref<4x10xf32, #tpu.memory_space<vmem>>, vector<4x10xf32>
    %cst = arith.constant dense<0.000000e+00> : vector<8x10xf32>
    %2 = tpu.matmul %0, %1, %cst {dimension_numbers = #tpu.dot_dimension_numbers<[1], [0], [0], [1], [0, 0, 1, 1], [], []>} : vector<8x4xf32>, vector<4x10xf32>, vector<8x10xf32> -> vector<8x10xf32>
    %c0_3 = arith.constant 0 : index
    %c0_4 = arith.constant 0 : index
    %3 = vector.load %arg2[%c0_3, %c0_4] : memref<1x10xf32, #tpu.memory_space<vmem>>, vector<1x10xf32>
    %4 = vector.broadcast %3 : vector<1x10xf32> to vector<8x10xf32>
    %5 = arith.addf %2, %4 : vector<8x10xf32>
    %cst_5 = arith.constant 0.000000e+00 : f32
    %6 = vector.broadcast %cst_5 : f32 to vector<8x10xf32>
    %7 = arith.maximumf %5, %6 : vector<8x10xf32>
    %cst_6 = arith.constant 6.000000e+00 : f32
    %8 = vector.broadcast %cst_6 : f32 to vector<8x10xf32>
    %9 = arith.minimumf %7, %8 : vector<8x10xf32>
    %c0_7 = arith.constant 0 : index
    %c0_8 = arith.constant 0 : index
    %10 = vector.load %arg3[%c0_7, %c0_8] : memref<10x2xf32, #tpu.memory_space<vmem>>, vector<10x2xf32>
    %cst_9 = arith.constant dense<0.000000e+00> : vector<8x2xf32>
    %11 = tpu.matmul %9, %10, %cst_9 {dimension_numbers = #tpu.dot_dimension_numbers<[1], [0], [0], [1], [0, 0, 1, 1], [], []>} : vector<8x10xf32>, vector<10x2xf32>, vector<8x2xf32> -> vector<8x2xf32>
    %c0_10 = arith.constant 0 : index
    %c0_11 = arith.constant 0 : index
    %12 = vector.load %arg4[%c0_10, %c0_11] : memref<1x2xf32, #tpu.memory_space<vmem>>, vector<1x2xf32>
    %13 = vector.broadcast %12 : vector<1x2xf32> to vector<8x2xf32>
    %14 = arith.addf %11, %13 : vector<8x2xf32>
    %c0_12 = arith.constant 0 : index
    %c0_13 = arith.constant 0 : index
    %15 = vector.load %arg5[%c0_12, %c0_13] : memref<8x2xf32, #tpu.memory_space<vmem>>, vector<8x2xf32>
    tpu.vector_store %arg5[%c0_12, %c0_13], %14 {strides = array<i32>} : memref<8x2xf32, #tpu.memory_space<vmem>>, vector<8x2xf32>,
    return
  }
}

</mosaic_0001>

<bundles_post_ra>
// kernel: net_forward.1
= control target key start
LH: loop header
LB: loop body
LE: loop exit
PB: predicated region body
PF: predicated region fallthrough
CT: control target
= control target key end

     0   :  { %vm30_vm0 = vcmask 1043456   ;;  %vm26_vm1 = vcmask 31744   ;;  %vm66_vm2 = vcmask 1041408   ;;  %vm62_vm3 = vcmask 80896   ;;  %s153_s1 = inlined_call_operand.vmem [shape: f32[4,10], index: 1, kind: input, shape index: {}]   ;;  %s154_s0 = inlined_call_operand.vmem [shape: f32[8,4], index: 0, kind: input, shape index: {}]   ;;  %s155_s2 = inlined_call_operand.vmem [shape: f32[1,10], index: 2, kind: input, shape index: {}]   ;;  %s156_s4 = inlined_call_operand.vmem [shape: f32[1,2], index: 4, kind: input, shape index: {}]   ;;  %s157_s3 = inlined_call_operand.vmem [shape: f32[10,2], index: 3, kind: input, shape index: {}]   ;;  %s158_s5 = inlined_call_operand.vmem [shape: f32[8,2], index: 5, kind: output, shape index: {}]  }
   0x1   :  { %v21_v0 = vld [vmem:[%s153_s1] sm:$0xf]  ;;  %v57_v2 = vld [vmem:[%s157_s3 + $0x8] sm:$0x3]  ;;  %vm90_vm4 = vcmask 15360  }
   0x2   :  { %v20_v1 = vld [vmem:[%s154_s0] sm:$0xff]  ;;  %96 = vmatpush.msk.msra.mxu0 %vm30_vm0, %v21_v0  ;;  %98 = vmatpush.msk.msra.mxu1 %vm66_vm2, %v57_v2 }
   0x3   :  { %97 = vmatmul.msk.f32.vlgmr.msra.gmra.mxu0 %vm26_vm1, %v20_v1  ;;  %v56_v3 = vld [vmem:[%s157_s3] sm:$0xff] }
   0x4   :  { %85 = vmatpush.msra.mxu1 %v56_v3  ;;  %v100_v4 = vld [vmem:[%s155_s2] ss:$0 sm:$0xff] }
   0x5   :  { %v101_v9 = vld [vmem:[%s156_s4] ss:$0 sm:$0xff] }
  0x80   :  { %v51_v5 = vpop.f32.mrf.mxu0 }
  0x81   :  { %v52_v6 = vadd.f32 %v100_v4, %v51_v5 }
  0x83   :  { %v54_v7 = vmax.f32 %v52_v6, 0.0 }
  0x85   :  { %v55_v8 = vmin.f32 %v54_v7, 6.0 }
  0x87   :  { %99 = vmatmul.msk.f32.vlgmr.msra.gmra.mxu1 %vm62_vm3, %v55_v8 }
 0x104   :  { %v87_v10 = vpop.f32.mrf.mxu1 }
 0x105   :  { %v88_v11 = vadd.f32 %v101_v9, %v87_v10 }
 0x107   :  { %91 = vst.msk [vmem:[%s158_s5] sm:$0xff] %vm90_vm4, %v88_v11 }

</bundles_post_ra>
